<compile_context>
chip_gen: v7x
topology: tpu7x:2x2x1
jax: 0.10.0
libtpu: 0.0.40
codegen_flags: <defaults>
</compile_context>

<pallas_src>
import jax
import jax.numpy as jnp
from jax import lax
from jax.experimental import pallas as pl
from jax.experimental.pallas import tpu as pltpu


def _round_up(x: int, m: int) -> int:
    return ((x + m - 1) // m) * m


def _cdiv(x: int, m: int) -> int:
    return (x + m - 1) // m


def _choose_seq_tile(max_seq: int, equal_lens: bool, d: int, itemsize: int) -> int:
    """Seq-tile size: ~512 rows, capped at ~2 MiB per block, layout-legal."""
    bytes_per_row = max(1, d * itemsize)
    cap = max(8, min(512, (2 * 1024 * 1024) // bytes_per_row))
    cap = max(8, (cap // 8) * 8)  # multiple of 8 (sublane tiling)
    if equal_lens and max_seq <= cap:
        # Single full-extent seq tile is always layout-legal when both
        # operands share the same seq length.
        return max_seq
    # Lengths differ (or multiple tiles needed): tile must be a multiple of 8.
    return min(cap, _round_up(max_seq, 8))


def _make_add_kernel(ts: int, s_short: int, needs_mask: bool):
    """Kernel body: out = long + (masked) short.  Static params closed over."""
    if not needs_mask:
        def kernel(long_ref, short_ref, out_ref):
            out_ref[...] = long_ref[...] + short_ref[...]
        return kernel

    def kernel(long_ref, short_ref, out_ref):
        s = pl.program_id(1)
        tile_fully_inside = (s + 1) * ts <= s_short

        # Interior tiles: pure streaming add (common case).
        @pl.when(tile_fully_inside)
        def _():
            out_ref[...] = long_ref[...] + short_ref[...]

        # Boundary / tail tiles: zero the short modality past its true length
        # (also masks the garbage rows of its partial edge block).
        @pl.when(jnp.logical_not(tile_fully_inside))
        def _():
            pos = s * ts + lax.broadcasted_iota(jnp.int32, short_ref.shape, 1)
            sv = short_ref[...]
            sv = jnp.where(pos < s_short, sv, jnp.zeros_like(sv))
            out_ref[...] = long_ref[...] + sv

    return kernel


def add_fusion(features_text: jax.Array, features_graph: jax.Array, *,
               seq_tile: int | None = None):
    """JAX/Pallas equivalent of Add_Fusion.forward.

    Args:
      features_text:  (B, S_text, D)
      features_graph: (B, S_graph, D)
    Returns:
      fused_embedding:         (B, max(S_text, S_graph), D)
      combined_attention_mask: (B, max(S_text, S_graph)) float32
    """
    B, s_text, D = features_text.shape
    Bg, s_graph, Dg = features_graph.shape
    assert B == Bg and D == Dg, "batch / hidden dims must match"

    out_dtype = jnp.result_type(features_text.dtype, features_graph.dtype)
    features_text = features_text.astype(out_dtype)
    features_graph = features_graph.astype(out_dtype)

    max_seq = max(s_text, s_graph)
    # Order operands so `long` spans the full max_seq (add is commutative).
    if s_text >= s_graph:
        long_feats, short_feats, s_short = features_text, features_graph, s_graph
    else:
        long_feats, short_feats, s_short = features_graph, features_text, s_text

    ts = seq_tile if seq_tile is not None else _choose_seq_tile(
        max_seq, s_text == s_graph, D, jnp.dtype(out_dtype).itemsize)
    n_seq_tiles = _cdiv(max_seq, ts)
    n_short_blocks = _cdiv(s_short, ts)
    needs_mask = s_short < max_seq

    kernel = _make_add_kernel(ts, s_short, needs_mask)

    long_spec = pl.BlockSpec((1, ts, D), lambda b, s: (b, s, 0))
    # Clamp the short tensor's seq block so DMAs for tail tiles stay in range
    # (consecutive identical block indices are not re-fetched by Pallas).
    short_spec = pl.BlockSpec(
        (1, ts, D), lambda b, s: (b, jnp.minimum(s, n_short_blocks - 1), 0))
    out_spec = pl.BlockSpec((1, ts, D), lambda b, s: (b, s, 0))

    fused = pl.pallas_call(
        kernel,
        out_shape=jax.ShapeDtypeStruct((B, max_seq, D), out_dtype),
        grid_spec=pltpu.PrefetchScalarGridSpec(
            num_scalar_prefetch=0,
            grid=(B, n_seq_tiles),
            in_specs=[long_spec, short_spec],
            out_specs=out_spec,
        ),
        compiler_params=pltpu.CompilerParams(
            dimension_semantics=("parallel", "parallel")),
    )(long_feats, short_feats)

    # Combined attention mask: O(B*S), depends only on static lengths, so it
    # is built in plain JAX (per perf review) instead of inside the hot kernel.
    min_seq = min(s_text, s_graph)
    pos = jnp.arange(max_seq, dtype=jnp.int32)
    combined_mask = jnp.broadcast_to(
        (pos < min_seq).astype(jnp.float32), (B, max_seq))

    return fused, combined_mask


def _reference(features_text, features_graph):
    """Pure-JAX reference mirroring the PyTorch forward."""
    B, s_text, D = features_text.shape
    _, s_graph, _ = features_graph.shape
    max_seq = max(s_text, s_graph)
    mask_text = jnp.concatenate(
        [jnp.ones((B, s_text)), jnp.zeros((B, max_seq - s_text))], axis=1)
    mask_graph = jnp.concatenate(
        [jnp.ones((B, s_graph)), jnp.zeros((B, max_seq - s_graph))], axis=1)
    ft = jnp.pad(features_text, ((0, 0), (0, max_seq - s_text), (0, 0)))
    fg = jnp.pad(features_graph, ((0, 0), (0, max_seq - s_graph), (0, 0)))
    return ft + fg, mask_text * mask_graph


def _check(ft, fg, **kw):
    fused, mask = add_fusion(ft, fg, **kw)
    fused = jax.block_until_ready(fused)
    mask = jax.block_until_ready(mask)
    fused_ref, mask_ref = _reference(ft, fg)
    assert fused.shape == fused_ref.shape
    assert mask.shape == mask_ref.shape
    assert jnp.allclose(fused, fused_ref, atol=1e-6)
    assert jnp.allclose(mask, mask_ref, atol=1e-6)


if __name__ == "__main__":
    key = jax.random.PRNGKey(0)
    k1, k2, k3, k4 = jax.random.split(key, 4)

    B, D = 2, 32
    S_TEXT, S_GRAPH = 6, 8  # unequal seq lens exercise the padding semantics

    features_text = jax.random.normal(k1, (B, S_TEXT, D), dtype=jnp.float32)
    features_graph = jax.random.normal(k2, (B, S_GRAPH, D), dtype=jnp.float32)

    # Primary case: text shorter than graph.
    _check(features_text, features_graph)
    # Swapped (graph shorter) and equal-length cases.
    _check(features_graph, features_text)
    _check(features_text, features_text)

    # Multi-tile path: forced small seq tile exercises the clamped index_map,
    # boundary-tile masking, and tail tiles.
    ft2 = jax.random.normal(k3, (B, 20, D), dtype=jnp.float32)
    fg2 = jax.random.normal(k4, (B, 40, D), dtype=jnp.float32)
    _check(ft2, fg2, seq_tile=8)

    print("KERNEL_OK")
</pallas_src>

<mosaic_0001>
module attributes {stable_mosaic.version = 11 : i64} {
  func.func @kernel(%arg0: i32, %arg1: i32, %arg2: memref<1x8x32xf32, #tpu.memory_space<vmem>>, %arg3: memref<1x8x32xf32, #tpu.memory_space<vmem>>, %arg4: memref<1x8x32xf32, #tpu.memory_space<vmem>>) attributes {dimension_semantics = [#tpu.dimension_semantics<parallel>, #tpu.dimension_semantics<parallel>], iteration_bounds = array<i64: 2, 1>, scalar_prefetch = 0 : i64, scratch_operands = 0 : i64, tpu.core_type = #tpu.core_type<tc>, window_params = [{transform_indices = @transform_0, window_bounds = array<i64: 1, 8, 32>}, {transform_indices = @transform_1, window_bounds = array<i64: 1, 8, 32>}, {transform_indices = @transform_2, window_bounds = array<i64: 1, 8, 32>}]} {
    %c1_i32 = arith.constant 1 : i32
    %0 = arith.addi %arg1, %c1_i32 : i32
    %c8_i32 = arith.constant 8 : i32
    %1 = arith.muli %0, %c8_i32 : i32
    %c6_i32 = arith.constant 6 : i32
    %2 = arith.cmpi sle, %1, %c6_i32 : i32
    %3 = arith.extui %2 : i1 to i32
    %c0_i32 = arith.constant 0 : i32
    %4 = arith.cmpi ne, %3, %c0_i32 : i32
    scf.if %4 {
      %c0 = arith.constant 0 : index
      %c0_1 = arith.constant 0 : index
      %c0_2 = arith.constant 0 : index
      %8 = vector.load %arg2[%c0, %c0_1, %c0_2] : memref<1x8x32xf32, #tpu.memory_space<vmem>>, vector<1x8x32xf32>
      %c0_3 = arith.constant 0 : index
      %c0_4 = arith.constant 0 : index
      %c0_5 = arith.constant 0 : index
      %9 = vector.load %arg3[%c0_3, %c0_4, %c0_5] : memref<1x8x32xf32, #tpu.memory_space<vmem>>, vector<1x8x32xf32>
      %10 = arith.addf %8, %9 : vector<1x8x32xf32>
      %c0_6 = arith.constant 0 : index
      %c0_7 = arith.constant 0 : index
      %c0_8 = arith.constant 0 : index
      %11 = vector.load %arg4[%c0_6, %c0_7, %c0_8] : memref<1x8x32xf32, #tpu.memory_space<vmem>>, vector<1x8x32xf32>
      tpu.vector_store %arg4[%c0_6, %c0_7, %c0_8], %10 {strides = array<i32>} : memref<1x8x32xf32, #tpu.memory_space<vmem>>, vector<1x8x32xf32>,
    } else {
    }
    %true = arith.constant true
    %5 = arith.xori %2, %true : i1
    %6 = arith.extui %5 : i1 to i32
    %c0_i32_0 = arith.constant 0 : i32
    %7 = arith.cmpi ne, %6, %c0_i32_0 : i32
    scf.if %7 {
      %c8_i32_1 = arith.constant 8 : i32
      %8 = arith.muli %arg1, %c8_i32_1 : i32
      %9 = tpu.iota {dimensions = array<i32: 1>} : vector<1x8x32xi32>
      %10 = vector.broadcast %8 : i32 to vector<1x8x32xi32>
      %11 = arith.addi %10, %9 : vector<1x8x32xi32>
      %c0 = arith.constant 0 : index
      %c0_2 = arith.constant 0 : index
      %c0_3 = arith.constant 0 : index
      %12 = vector.load %arg3[%c0, %c0_2, %c0_3] : memref<1x8x32xf32, #tpu.memory_space<vmem>>, vector<1x8x32xf32>
      %c6_i32_4 = arith.constant 6 : i32
      %13 = vector.broadcast %c6_i32_4 : i32 to vector<1x8x32xi32>
      %14 = arith.cmpi slt, %11, %13 : vector<1x8x32xi32>
      %cst = arith.constant 0.000000e+00 : f32
      %15 = vector.broadcast %cst : f32 to vector<1x8x32xf32>
      %16 = arith.select %14, %12, %15 : vector<1x8x32xi1>, vector<1x8x32xf32>
      %c0_5 = arith.constant 0 : index
      %c0_6 = arith.constant 0 : index
      %c0_7 = arith.constant 0 : index
      %17 = vector.load %arg2[%c0_5, %c0_6, %c0_7] : memref<1x8x32xf32, #tpu.memory_space<vmem>>, vector<1x8x32xf32>
      %18 = arith.addf %17, %16 : vector<1x8x32xf32>
      %c0_8 = arith.constant 0 : index
      %c0_9 = arith.constant 0 : index
      %c0_10 = arith.constant 0 : index
      %19 = vector.load %arg4[%c0_8, %c0_9, %c0_10] : memref<1x8x32xf32, #tpu.memory_space<vmem>>, vector<1x8x32xf32>
      tpu.vector_store %arg4[%c0_8, %c0_9, %c0_10], %18 {strides = array<i32>} : memref<1x8x32xf32, #tpu.memory_space<vmem>>, vector<1x8x32xf32>,
    } else {
    }
    return
  }
  func.func @transform_0(%arg0: i32, %arg1: i32) -> (i32, i32, i32) {
    %c0_i32 = arith.constant 0 : i32
    %c0_i32_0 = arith.constant 0 : i32
    return %arg0, %arg1, %c0_i32 : i32, i32, i32
  }
  func.func @transform_1(%arg0: i32, %arg1: i32) -> (i32, i32, i32) {
    %c0_i32 = arith.constant 0 : i32
    %0 = arith.minsi %arg1, %c0_i32 : i32
    %c0_i32_0 = arith.constant 0 : i32
    %c0_i32_1 = arith.constant 0 : i32
    return %arg0, %0, %c0_i32_0 : i32, i32, i32
  }
  func.func @transform_2(%arg0: i32, %arg1: i32) -> (i32, i32, i32) {
    %c0_i32 = arith.constant 0 : i32
    %c0_i32_0 = arith.constant 0 : i32
    return %arg0, %arg1, %c0_i32 : i32, i32, i32
  }
}

</mosaic_0001>

<bundles_post_ra>
// kernel: tpu_custom_call.1
= control target key start
LH: loop header
LB: loop body
LE: loop exit
PB: predicated region body
PF: predicated region fallthrough
CT: control target
= control target key end

     0   :  { %7 = vsyncpa [#allocation3], 0  ;;  %s613_s0 = inlined_call_operand.vmem [shape: f32[2,8,32], index: 0, kind: input, shape index: {}]   ;;  %s614_s1 = inlined_call_operand.vmem [shape: f32[2,6,32], index: 1, kind: input, shape index: {}]   ;;  %s615_s2 = inlined_call_operand.hbm [shape: f32[2,8,32], index: 2, kind: output, shape index: {}]  }
   0x1   :  { %9 = vsyncpa [#allocation3 + $0x1], 0  ;;  %s498_s9 = smov 0   ;;  %s500_s10 = smov 0  }
   0x2   :  { %s502_s11 = smov 0   ;;  %s504_s12 = smov 0  }
   0x3   :  { %s506_s13 = smov 0   ;;  %s508_s14 = smov 0  }
   0x4 LB: > { %s334_s15 = sadd.s32 4294967295, %s480_s14   ;;  %s335_s16 = sadd.s32 4294967294, %s480_s14   ;;  %s480_s14 = sphi %s508_s14, %s15_s14   ;;  %s476_s13 = sphi %s506_s13, %s622_s13   ;;  %s472_s12 = sphi %s504_s12, %s621_s12   ;;  %s468_s11 = sphi %s502_s11, %s620_s11   ;;  %s464_s10 = sphi %s500_s10, %s619_s10   ;;  %s460_s9 = sphi %s498_s9, %s618_s9  }
   0x5   : > { %s27_s17 = sadd.s32 1, %s476_s13  ;;  %s96_s18 = sadd.s32 1, %s468_s11 }
   0x6   : > { %p29_p0 = scmp.ge.s32.totalorder %s27_s17, 2  ;;  %p106_p1 = scmp.ne.s32.totalorder %s468_s11, %s464_s10 }
   0x7   : > { %p107_p2 = scmp.eq.s32.totalorder %s334_s15, 1  ;;  %p112_p3 = scmp.ne.s32.totalorder %s464_s10, %s460_s9 }
   0x8   : > { %s624_s17 = smov (%p29_p0, %s27_s17), 0  ;;  %p113_p5 = scmp.eq.s32.totalorder %s335_s16, 1 }
   0x9   : > { %p538_p4 = por %p107_p2, %p106_p1  ;;  %s91_s20 = ssub.s32 %s476_s13, %s624_s17 }
   0xa   : > { %p338_p6 = scmp.ge.s32.totalorder %s480_s14, 1  ;;  %p94_p7 = scmp.eq.s32.totalorder %s91_s20, 0 }
   0xb   : > { %p545_p8 = por %p113_p5, %p112_p3  ;;  %p155_p9 = scmp.lt.s32.totalorder %s480_s14, 3 }
   0xc   : > { %s551_s22 = scalar_select %p94_p7, %s468_s11, %s96_s18  }
   0xd   : > { %p156_p10 = pnand %p338_p6, %p155_p9 }
   0xe   : > { %s185_s23 = sand.u32 (!%p156_p10), 1, %s464_s10   ;;  %p188_p11 = scmp.lt.s32.totalorder (!%p156_p10), %s472_s12, 1  ;;  %vm231_vm0 = vcmask (!%p156_p10), 261120  }
   0xf   : > { %159 = sbr.rel (%p156_p10) target bundleno = 45 (0x2d), region = 28  ;;  %s339_s24 = sshll.u32 (!%p156_p10), %s185_s23, 3 }
  0x10   : > { %s344_s26 = sshll.u32 (!%p156_p10), %s472_s12, 7  ;;  %s187_s28 = scalar_lea.vmem (!%p156_p10), [#allocation2], %s339_s24 }
  0x11   : > { %s248_s29 = sshll.u32 (!%p156_p10), %s187_s28, 4  ;;  %s568_s15 = scalar_lea.hbm (!%p156_p10), %s615_s2, %s344_s26  ;;  %s563_s29 = int_to_ptr.vmem [resolvable:$true] %s248_s29 }
  0x12   : > { %s234_s16 = scalar_lea.sflag (!%p156_p10), [#allocation3], %s185_s23  ;;  %s402_s18 = scalar_lea.vmem (!%p156_p10), %s563_s29, 128 }
  0x13   : > { %p403_p12 = scmp.ne.s32.totalorder (!%p156_p10), %s563_s29, %s402_s18  ;;  %s482_s20 = smov (!%p156_p10), [#allocation2]  }
  0x14   : > { %s406_s24 = sshll.u32 (!%p156_p10), %s482_s20, 4  ;;  %s407_s24 = int_to_ptr.vmem [resolvable:$false] %s406_s24 }
  0x15   : > { %p404_p13 = pnand (!%p156_p10), %p403_p12, %p538_p4  ;;  %p409_p1 = scmp.lt.s32.totalorder (!%p156_p10), %s563_s29, %s407_s24 }
  0x16   : > { %s189_s25 = scalar_select %p188_p11, %s472_s12, 1 }
  0x17   : > { %p405_p0 = pneg %p404_p13 }
  0x18   : > { %s340_s27 = sshll.u32 %s189_s25, 3  ;;  %s408_s25 = scalar_lea.vmem %s407_s24, 256 }
  0x19   : > { %s194_s4 = scalar_lea.vmem %s613_s0, %s340_s27  ;;  %s203_s7 = scalar_lea.vmem %s614_s1, %s340_s27 }
  0x1a   : > { %v342_v0 = vld [vmem:[%s203_s7] sm:$0x3f]  ;;  %p410_p2 = scmp.lt.s32.totalorder %s408_s25, %s402_s18 }
  0x1b   : > { %v229_v1 = vld [vmem:[%s194_s4] sm:$0xff] }
  0x1c   : > { %v230_v2 = vadd.f32 %v342_v0, %v229_v1  ;;  %p411_p3 = por %p410_p2, %p409_p1 }
  0x1e   : > { %232 = vst.msk [vmem:[%s187_s28] sm:$0xff] %vm231_vm0, %v230_v2  ;;  %p412_p5 = pnand %p411_p3, %p405_p0 }
  0x20   : > { %415 = shalt.err (!%p412_p5)
}
  0x21   : > { %s416_s23 = scalar_lea.hbm %s568_s15, 128  ;;  %s420_s28 = scalar_lea.hbm %s615_s2, 256 }
  0x22   : > { %p417_p6 = scmp.ne.s32.totalorder %s568_s15, %s416_s23  ;;  %p421_p10 = scmp.lt.u32.totalorder %s568_s15, %s615_s2 }
  0x23   : > { %p422_p11 = scmp.lt.u32.totalorder %s420_s28, %s416_s23  ;;  %p424_p13 = scmp.lt.u32.totalorder %s416_s23, %s568_s15 }
  0x24   : > { %p418_p7 = pnand %p417_p6, %p538_p4 }
  0x25   : > { %p423_p12 = por %p422_p11, %p421_p10 }
  0x26   : > { %p419_p9 = pneg %p418_p7 }
  0x27   : > { %p425_p0 = por %p424_p13, %p423_p12 }
  0x29   : > { %p426_p1 = pnand %p425_p0, %p419_p9 }
  0x2b   : > { %429 = shalt.err (!%p426_p1)
}
  0x2c   : > { %347 = dma.vmem_to_hbm [thread:$0]  (%p538_p4), %s563_s29, 128, %s568_s15, %s234_s16  }
  0x2d PF: > { %p353_p2 = scmp.ge.s32.totalorder %s480_s14, 2  ;;  %s260_s4 = sand.u32 1, %s460_s9  }
  0x2e   : > { %s261_s5 = scalar_lea.sflag [#allocation3], %s260_s4 }
  0x2f   : > { %p350_p3 = pnand %p353_p2, %p545_p8 }
  0x31   : > { %455 = dma.done.wait (!%p350_p3), %s261_s5, 128  }
  0x32   : > { %457 = vsyncadd (!%p350_p3), %s261_s5, 4294967168  ;;  %s15_s14 = sadd.s32 1, %s480_s14   ;;  %s618_s9 = smov %s464_s10 }
  0x33   : > { %p12_p5 = scmp.ge.s32.totalorder %s15_s14, 4   ;;  %s619_s10 = smov %s468_s11 }
  0x34   : > { %s620_s11 = smov %s551_s22  ;;  %s621_s12 = smov %s476_s13 }
  0x35   : > { %s622_s13 = smov %s624_s17  ;;  %14 = sbr.rel (!%p12_p5) target bundleno = 4 (0x4), region = 74 }
  0x3c   :  { %266 = vsyncpa [#allocation3], 1 }
  0x3d   :  { %268 = vsyncpa [#allocation3 + $0x1], 1 }

</bundles_post_ra>
